<compile_context>
chip_gen: v6e
topology: v6e:2x2x1
jax: 0.10.0
libtpu: 0.0.40
codegen_flags: <defaults>
</compile_context>

<pallas_src>
import jax
import jax.numpy as jnp
from jax.experimental import pallas as pl
from jax.experimental.pallas import tpu as pltpu

_EPS = 1e-9  # matches the PyTorch module

# Per-batch S1*S2*D threshold below which the cross term is computed on the
# VPU (broadcast-reduce) instead of the MXU (batched dot_general).
_VPU_CROSS_MAX_PER_BATCH = 16384


def _mask_to_f32(m):
    """In-kernel cast of a native-dtype mask block to f32 (exact for 0/1)."""
    if m.dtype == jnp.bool_:
        return jnp.where(m, jnp.float32(1.0), jnp.float32(0.0))
    return m.astype(jnp.float32)


def _neg_kl_kernel(x1_ref, m1_ref, x2_ref, m2_ref, o_ref):
    # Blocks: (bt, S1, D), (bt, S1, D), (bt, S2, D), (bt, S2, D) -> (bt, S1, S2)
    p = x1_ref[...].astype(jnp.float32) * _mask_to_f32(m1_ref[...])
    q = x2_ref[...].astype(jnp.float32) * _mask_to_f32(m2_ref[...])

    logq = jnp.log(q + _EPS)  # EUP; computed once per q row, reused for all i

    # sum_d p * log(p+eps)  ->  (bt, S1, 1)
    self_term = jnp.sum(p * jnp.log(p + _EPS), axis=-1, keepdims=True)

    S1, D = p.shape[1], p.shape[2]
    S2 = q.shape[1]

    if S1 * S2 * D <= _VPU_CROSS_MAX_PER_BATCH:
        # Tiny per-batch cross term: a batched matmul would unroll into bt
        # separate sub-1%-utilization MXU push/pop round-trips; the broadcast
        # intermediate here is only a handful of vregs per batch index.
        cross = jnp.sum(p[:, :, None, :] * logq[:, None, :, :], axis=-1)
    else:
        # Large-D path: MXU contraction over the last dims (no transpose of
        # logq is materialized). HIGHEST precision keeps f32 parity with the
        # PyTorch reference (logq ~ -20.7 at masked positions).
        cross = jnp.einsum(
            "bid,bjd->bij",
            p,
            logq,
            preferred_element_type=jnp.float32,
            precision=jax.lax.Precision.HIGHEST,
        )

    # -KL = cross - self
    o_ref[...] = (cross - self_term).astype(o_ref.dtype)


def _sublane_tile(dtype):
    """Sublane tile height for a dtype (f32: 8, bf16/f16: 16, 1-byte: 32)."""
    return {1: 32, 2: 16, 4: 8}.get(jnp.dtype(dtype).itemsize, 8)


def _padded_2d_bytes(rows, cols, dtype):
    """VMEM footprint of a (rows, cols) slab after (sublane, 128) tile padding."""
    dt = jnp.dtype(dtype)
    sub = _sublane_tile(dt)
    r = -(-rows // sub) * sub
    c = -(-cols // 128) * 128
    return r * c * dt.itemsize


def _vmem_params():
    """(per-step tile budget, scoped-vmem cap) per TPU generation."""
    physical = 64 << 20
    try:
        physical = int(
            getattr(pltpu.get_tpu_info(), "vmem_capacity_bytes", physical)
        )
    except Exception:
        pass
    if physical >= (96 << 20):  # v5e / v6e: 128 MiB physical VMEM
        return 32 << 20, 96 << 20
    return 16 << 20, 48 << 20  # v7x: 64 MiB physical -> stay well below it


def _pick_batch_tile(batch, step_bytes_fn, budget_bytes):
    """Largest batch tile whose double-buffered padded footprint fits.

    Whole batch in a single grid step whenever it fits: at this module's tiny
    shapes the ~0.35 us per-step overhead dominates the compute, so extra grid
    steps are pure overhead. step_bytes_fn is linear in bt, so the fallback is
    a direct division (non-divisor bt is fine; the grid uses pl.cdiv)."""
    if 2 * step_bytes_fn(batch) <= budget_bytes:
        return batch
    per = max(1, step_bytes_fn(1))
    return max(1, min(batch, budget_bytes // (2 * per)))


def negative_kl_div(input1, mask1, input2, mask2):
    """input1/mask1: (B, S1, D); input2/mask2: (B, S2, D) -> (B, S1, S2)."""
    B, S1, D = input1.shape
    B2, S2, D2 = input2.shape
    assert B == B2 and D == D2, "batch / hidden dims must match"

    # Stream masks in their native dtype: bool / (u)int8 stay 1-byte (cast to
    # f32 inside the kernel); only wide integer / f64 masks are down-converted
    # (exact for 0/1 masks). No bool->bf16 up-conversion.
    def _stream(m):
        if m.dtype == jnp.bool_ or jnp.dtype(m.dtype).itemsize == 1:
            return m
        if m.dtype in (jnp.float32, jnp.bfloat16, jnp.float16):
            return m
        return m.astype(jnp.float32)

    mask1 = _stream(mask1)
    mask2 = _stream(mask2)

    use_vpu_cross = (S1 * S2 * D) <= _VPU_CROSS_MAX_PER_BATCH

    def step_bytes(bt):
        """(8,128)/(32,128)-padding-aware VMEM footprint of one grid step."""
        b = bt * (
            _padded_2d_bytes(S1, D, input1.dtype)
            + _padded_2d_bytes(S1, D, mask1.dtype)
            + _padded_2d_bytes(S2, D, input2.dtype)
            + _padded_2d_bytes(S2, D, mask2.dtype)
            + _padded_2d_bytes(S1, S2, jnp.float32)       # output block
            + 2 * _padded_2d_bytes(S1, D, jnp.float32)    # p, log(p) working set
            + 2 * _padded_2d_bytes(S2, D, jnp.float32)    # q, log(q) working set
        )
        if use_vpu_cross:
            # broadcast intermediate (bt, S1, S2, D) f32, padded on (S2, D)
            b += bt * S1 * _padded_2d_bytes(S2, D, jnp.float32)
        return b

    budget, vmem_cap = _vmem_params()
    bt = _pick_batch_tile(B, step_bytes, budget)
    grid = (pl.cdiv(B, bt),)

    # Blocks only tile the batch axis; the last two dims equal the full array
    # dims, so the (8,128) BlockSpec constraint is satisfied for every dtype.
    in_specs = [
        pl.BlockSpec((bt, S1, D), lambda b: (b, 0, 0)),
        pl.BlockSpec((bt, S1, D), lambda b: (b, 0, 0)),
        pl.BlockSpec((bt, S2, D), lambda b: (b, 0, 0)),
        pl.BlockSpec((bt, S2, D), lambda b: (b, 0, 0)),
    ]
    out_specs = pl.BlockSpec((bt, S1, S2), lambda b: (b, 0, 0))

    # Double-buffered footprint + headroom, capped well below physical VMEM.
    vmem_limit = int(min(vmem_cap, max(16 << 20, 2 * step_bytes(bt) + (4 << 20))))

    return pl.pallas_call(
        _neg_kl_kernel,
        out_shape=jax.ShapeDtypeStruct((B, S1, S2), jnp.float32),
        grid_spec=pltpu.PrefetchScalarGridSpec(
            num_scalar_prefetch=0,
            grid=grid,
            in_specs=in_specs,
            out_specs=out_specs,
        ),
        compiler_params=pltpu.CompilerParams(
            dimension_semantics=("parallel",),
            vmem_limit_bytes=vmem_limit,
        ),
    )(input1, mask1, input2, mask2)


def _reference(input1, mask1, input2, mask2):
    p = input1.astype(jnp.float32) * mask1.astype(jnp.float32)
    q = input2.astype(jnp.float32) * mask2.astype(jnp.float32)
    div = jnp.sum(
        p[:, :, None, :]
        * (jnp.log(p + _EPS)[:, :, None, :] - jnp.log(q + _EPS)[:, None, :, :]),
        axis=-1,
    )
    return -div


if __name__ == "__main__":
    key = jax.random.PRNGKey(0)
    k1, k2, k3, k4 = jax.random.split(key, 4)

    # Module spec: input shape (bs, 4/1, num_head*n_obj); e.g. num_head=8, n_obj=4.
    B, S1, S2, D = 2, 4, 4, 32

    # Distribution-like non-negative inputs (KL operands).
    input1 = jax.nn.softmax(
        jax.random.normal(k1, (B, S1, D), dtype=jnp.float32), axis=-1
    )
    input2 = jax.nn.softmax(
        jax.random.normal(k2, (B, S2, D), dtype=jnp.float32), axis=-1
    )
    # 0/1 boolean masks (the PyTorch module calls .float() on them).
    mask1 = jax.random.uniform(k3, (B, S1, D)) > 0.3
    mask2 = jax.random.uniform(k4, (B, S2, D)) > 0.3

    out = jax.block_until_ready(negative_kl_div(input1, mask1, input2, mask2))

    ref = _reference(
        input1, mask1.astype(jnp.float32), input2, mask2.astype(jnp.float32)
    )
    assert out.shape == (B, S1, S2)
    max_err = float(jnp.max(jnp.abs(out - ref)))
    assert jnp.allclose(out, ref, atol=2e-4, rtol=2e-4), max_err

    print("KERNEL_OK")
</pallas_src>

<mosaic_0001>
module attributes {stable_mosaic.version = 11 : i64} {
  func.func @_neg_kl_kernel(%arg0: i32, %arg1: memref<2x4x32xf32, #tpu.memory_space<vmem>>, %arg2: memref<2x4x32xi32, #tpu.memory_space<vmem>>, %arg3: memref<2x4x32xf32, #tpu.memory_space<vmem>>, %arg4: memref<2x4x32xi32, #tpu.memory_space<vmem>>, %arg5: memref<2x4x4xf32, #tpu.memory_space<vmem>>) attributes {dimension_semantics = [#tpu.dimension_semantics<parallel>], iteration_bounds = array<i64: 1>, scalar_prefetch = 0 : i64, scratch_operands = 0 : i64, tpu.core_type = #tpu.core_type<tc>, window_params = [{transform_indices = @transform_0, window_bounds = array<i64: 2, 4, 32>}, {transform_indices = @transform_1, window_bounds = array<i64: 2, 4, 32>}, {transform_indices = @transform_2, window_bounds = array<i64: 2, 4, 32>}, {transform_indices = @transform_3, window_bounds = array<i64: 2, 4, 32>}, {transform_indices = @transform_4, window_bounds = array<i64: 2, 4, 4>}]} {
    %c0 = arith.constant 0 : index
    %c0_0 = arith.constant 0 : index
    %c0_1 = arith.constant 0 : index
    %0 = vector.load %arg1[%c0, %c0_0, %c0_1] : memref<2x4x32xf32, #tpu.memory_space<vmem>>, vector<2x4x32xf32>
    %c0_2 = arith.constant 0 : index
    %c0_3 = arith.constant 0 : index
    %c0_4 = arith.constant 0 : index
    %1 = vector.load %arg2[%c0_2, %c0_3, %c0_4] : memref<2x4x32xi32, #tpu.memory_space<vmem>>, vector<2x4x32xi32>
    %cst = arith.constant dense<0> : vector<2x4x32xi32>
    %2 = arith.cmpi ne, %1, %cst : vector<2x4x32xi32>
    %cst_5 = arith.constant 1.000000e+00 : f32
    %cst_6 = arith.constant 0.000000e+00 : f32
    %3 = vector.broadcast %cst_5 : f32 to vector<2x4x32xf32>
    %4 = vector.broadcast %cst_6 : f32 to vector<2x4x32xf32>
    %5 = arith.select %2, %3, %4 : vector<2x4x32xi1>, vector<2x4x32xf32>
    %6 = arith.mulf %0, %5 : vector<2x4x32xf32>
    %c0_7 = arith.constant 0 : index
    %c0_8 = arith.constant 0 : index
    %c0_9 = arith.constant 0 : index
    %7 = vector.load %arg3[%c0_7, %c0_8, %c0_9] : memref<2x4x32xf32, #tpu.memory_space<vmem>>, vector<2x4x32xf32>
    %c0_10 = arith.constant 0 : index
    %c0_11 = arith.constant 0 : index
    %c0_12 = arith.constant 0 : index
    %8 = vector.load %arg4[%c0_10, %c0_11, %c0_12] : memref<2x4x32xi32, #tpu.memory_space<vmem>>, vector<2x4x32xi32>
    %cst_13 = arith.constant dense<0> : vector<2x4x32xi32>
    %9 = arith.cmpi ne, %8, %cst_13 : vector<2x4x32xi32>
    %cst_14 = arith.constant 1.000000e+00 : f32
    %cst_15 = arith.constant 0.000000e+00 : f32
    %10 = vector.broadcast %cst_14 : f32 to vector<2x4x32xf32>
    %11 = vector.broadcast %cst_15 : f32 to vector<2x4x32xf32>
    %12 = arith.select %9, %10, %11 : vector<2x4x32xi1>, vector<2x4x32xf32>
    %13 = arith.mulf %7, %12 : vector<2x4x32xf32>
    %cst_16 = arith.constant 9.99999971E-10 : f32
    %14 = vector.broadcast %cst_16 : f32 to vector<2x4x32xf32>
    %15 = arith.addf %13, %14 : vector<2x4x32xf32>
    %16 = math.log %15 : vector<2x4x32xf32>
    %cst_17 = arith.constant 9.99999971E-10 : f32
    %17 = vector.broadcast %cst_17 : f32 to vector<2x4x32xf32>
    %18 = arith.addf %6, %17 : vector<2x4x32xf32>
    %19 = math.log %18 : vector<2x4x32xf32>
    %20 = arith.mulf %6, %19 : vector<2x4x32xf32>
    %cst_18 = arith.constant dense<0.000000e+00> : vector<2x4xf32>
    %21 = vector.multi_reduction <add>, %20, %cst_18 [2] : vector<2x4x32xf32> to vector<2x4xf32>
    %22 = vector.shape_cast %21 : vector<2x4xf32> to vector<2x4x1xf32>
    %23 = vector.shape_cast %6 : vector<2x4x32xf32> to vector<2x4x1x32xf32>
    %24 = vector.shape_cast %16 : vector<2x4x32xf32> to vector<2x1x4x32xf32>
    %25 = vector.broadcast %23 : vector<2x4x1x32xf32> to vector<2x4x4x32xf32>
    %26 = vector.broadcast %24 : vector<2x1x4x32xf32> to vector<2x4x4x32xf32>
    %27 = arith.mulf %25, %26 : vector<2x4x4x32xf32>
    %cst_19 = arith.constant dense<0.000000e+00> : vector<2x4x4xf32>
    %28 = vector.multi_reduction <add>, %27, %cst_19 [3] : vector<2x4x4x32xf32> to vector<2x4x4xf32>
    %29 = vector.broadcast %22 : vector<2x4x1xf32> to vector<2x4x4xf32>
    %30 = arith.subf %28, %29 : vector<2x4x4xf32>
    %c0_20 = arith.constant 0 : index
    %c0_21 = arith.constant 0 : index
    %c0_22 = arith.constant 0 : index
    %31 = vector.load %arg5[%c0_20, %c0_21, %c0_22] : memref<2x4x4xf32, #tpu.memory_space<vmem>>, vector<2x4x4xf32>
    tpu.vector_store %arg5[%c0_20, %c0_21, %c0_22], %30 {strides = array<i32>} : memref<2x4x4xf32, #tpu.memory_space<vmem>>, vector<2x4x4xf32>,
    return
  }
  func.func @transform_0(%arg0: i32) -> (i32, i32, i32) {
    %c0_i32 = arith.constant 0 : i32
    %c0_i32_0 = arith.constant 0 : i32
    %c0_i32_1 = arith.constant 0 : i32
    return %arg0, %c0_i32, %c0_i32_0 : i32, i32, i32
  }
  func.func @transform_1(%arg0: i32) -> (i32, i32, i32) {
    %c0_i32 = arith.constant 0 : i32
    %c0_i32_0 = arith.constant 0 : i32
    %c0_i32_1 = arith.constant 0 : i32
    return %arg0, %c0_i32, %c0_i32_0 : i32, i32, i32
  }
  func.func @transform_2(%arg0: i32) -> (i32, i32, i32) {
    %c0_i32 = arith.constant 0 : i32
    %c0_i32_0 = arith.constant 0 : i32
    %c0_i32_1 = arith.constant 0 : i32
    return %arg0, %c0_i32, %c0_i32_0 : i32, i32, i32
  }
  func.func @transform_3(%arg0: i32) -> (i32, i32, i32) {
    %c0_i32 = arith.constant 0 : i32
    %c0_i32_0 = arith.constant 0 : i32
    %c0_i32_1 = arith.constant 0 : i32
    return %arg0, %c0_i32, %c0_i32_0 : i32, i32, i32
  }
  func.func @transform_4(%arg0: i32) -> (i32, i32, i32) {
    %c0_i32 = arith.constant 0 : i32
    %c0_i32_0 = arith.constant 0 : i32
    %c0_i32_1 = arith.constant 0 : i32
    return %arg0, %c0_i32, %c0_i32_0 : i32, i32, i32
  }
}

</mosaic_0001>

<bundles_post_ra>
// kernel: tpu_custom_call.1
= control target key start
LH: loop header
LB: loop body
LE: loop exit
PB: predicated region body
PF: predicated region fallthrough
CT: control target
= control target key end

     0   :  { %v64_v2 = vlaneseq  ;;  %v365_v5 = vmov 0.0   ;;  %v366_v9 = vmov 1966171168   ;;  %s461_s0 = inlined_call_operand.vmem [shape: f32[2,4,32], index: 0, kind: input, shape index: {}]   ;;  %s462_s1 = inlined_call_operand.vmem [shape: s32[2,4,32], index: 1, kind: input, shape index: {}]   ;;  %s463_s2 = inlined_call_operand.vmem [shape: f32[2,4,32], index: 2, kind: input, shape index: {}]   ;;  %s464_s3 = inlined_call_operand.vmem [shape: s32[2,4,32], index: 3, kind: input, shape index: {}]   ;;  %s465_s4 = inlined_call_operand.hbm [shape: f32[2,4,4], index: 4, kind: output, shape index: {}]  }
   0x1   :  { %v18_v0 = vld [vmem:[%s461_s0] sm:$0xf]  ;;  %v62_v10 = vunpack.c.l.s4 %v366_v9  ;;  %v19_v12 = vld [vmem:[%s461_s0 + $0x4] sm:$0xf] }
   0x2   :  { %v20_v1 = vld [vmem:[%s462_s1] sm:$0xf]  ;;  %v409_v11 = vshrl.u32 %v64_v2, 7  ;;  %v21_v13 = vld [vmem:[%s462_s1 + $0x4] sm:$0xf] }
   0x3   :  { %vm22_vm0 = vcmp.ne.s32.totalorder %v20_v1, 0  ;;  %v28_v3 = vld [vmem:[%s463_s2] sm:$0xf]  ;;  %vm23_vm2 = vcmp.ne.s32.totalorder %v21_v13, 0  ;;  %v29_v15 = vld [vmem:[%s463_s2 + $0x4] sm:$0xf]  ;;  %v63_v17 = vunpack.c.0.s8 %v62_v10 }
   0x4   :  { %v30_v4 = vld [vmem:[%s464_s3] sm:$0xf]  ;;  %v24_v6 = vsel %vm22_vm0, 1.0, %v365_v5  ;;  %v31_v16 = vld [vmem:[%s464_s3 + $0x4] sm:$0xf]  ;;  %v25_v19 = vsel %vm23_vm2, 1.0, %v365_v5 }
   0x5   :  { %vm32_vm1 = vcmp.ne.s32.totalorder %v30_v4, 0  ;;  %v26_v7 = vmul.f32 %v24_v6, %v18_v0  ;;  %vm33_vm3 = vcmp.ne.s32.totalorder %v31_v16, 0 }
   0x6   :  { %v34_v8 = vsel %vm32_vm1, 1.0, %v365_v5 }
   0x7   :  { %v36_v14 = vmul.f32 %v34_v8, %v28_v3  ;;  %v44_v18 = vadd.f32 1e-09, %v26_v7 }
   0x8   :  { %9 = vsyncpa [#allocation3], 0  ;;  %v27_v21 = vmul.f32 %v25_v19, %v19_v12  ;;  %v35_v22 = vsel %vm33_vm3, 1.0, %v365_v5  ;;  %v66_v23 = vsub.s32 %v63_v17, %v409_v11  ;;  %v425_v31 = vsub.s32 0, %v409_v11  ;;  %s368_s0 = smov [#allocation2]  }
   0x9   :  { %v38_v20 = vadd.f32 1e-09, %v36_v14  ;;  %335 = vlog2.f32 %v44_v18  ;;  %v37_v24 = vmul.f32 %v35_v22, %v29_v15  ;;  %vm52_vm4 = vcmask 257024   ;;  %s316_s1 = sshll.u32 %s368_s0, 4  ;;  %s317_s1 = int_to_ptr.vmem [resolvable:$true] %s316_s1 }
   0xa   :  { %v45_v25 = vadd.f32 1e-09, %v27_v21  ;;  %v67_v27 = vrot.slane %v26_v7, %v66_v23  ;;  %v91_v29 = vrot.slane %v27_v21, %v66_v23  ;;  %v367_v12 = vmov 0   ;;  %s343_s2 = scalar_lea.vmem %s317_s1, 128  ;;  %p348_p1 = scmp.lt.s32.totalorder %s317_s1, %s317_s1 }
   0xb   :  { %337 = vlog2.f32 %v38_v20  ;;  %v39_v26 = vadd.f32 1e-09, %v37_v24  ;;  %333 = vset.pattern.permute.xlu0 %v367_v12  ;;  %334 = vset.pattern.permute.xlu1 %v367_v12  ;;  %v189_v16 = vsub.s32 1, %v409_v11  ;;  %vm297_vm5 = vcmask 1041409   ;;  %p344_p0 = scmp.ne.s32.totalorder %s317_s1, %s343_s2  ;;  %p349_p2 = scmp.lt.s32.totalorder %s343_s2, %s343_s2 }
   0xc   :  { %339 = vlog2.f32 %v45_v25  ;;  %v68_v28 = vcombine.high %v67_v27, %v67_v27  ;;  %v75_v30 = vrot.slane %v67_v27, %v66_v23  ;;  %v92_v33 = vcombine.high %v91_v29, %v91_v29 }
   0xd   :  { %341 = vlog2.f32 %v39_v26  ;;  %v99_v34 = vrot.slane %v91_v29, %v66_v23  ;;  %v193_v29 = vsub.s32 2, %v409_v11  ;;  %vm299_vm6 = vcmask 1042434   ;;  %p350_p3 = por %p349_p2, %p348_p1 }
   0xe   :  { %v82_v32 = vrot.slane %v68_v28, %v66_v23  ;;  %v112_v36 = vrot.slane %v75_v30, %v425_v31  ;;  %v106_v38 = vrot.slane %v92_v33, %v66_v23  ;;  %v83_v46 = vcombine.high %v75_v30, %v75_v30 }
   0xf   :  { %v128_v44 = vrot.slane %v99_v34, %v425_v31  ;;  %v107_v45 = vcombine.high %v99_v34, %v99_v34  ;;  %vm301_vm7 = vcmask 1043459   ;;  %vm308_vm8 = vcmask 27648   ;;  %p351_p4 = pnand %p350_p3, %p344_p0 }
  0x10   :  { %v116_v37 = vrot.slane %v82_v32, %v425_v31  ;;  %v132_v51 = vrot.slane %v106_v38, %v425_v31  ;;  %v120_v57 = vrot.slane %v83_v46, %v425_v31  ;;  %v108_v58 = vcombine.high %v106_v38, %v106_v38 }
  0x11   :  { %v84_v59 = vcombine.high %v82_v32, %v82_v32  ;;  %v136_v63 = vrot.slane %v107_v45, %v425_v31 }
  0x12   :  { %v140_v6 = vrot.slane %v108_v58, %v425_v31 }
  0x13   :  { %v124_v3 = vrot.slane %v84_v59, %v425_v31 }
  0x16   :  { %v336_v35 = vpop.eup %335 }
  0x17   :  { %v47_v40 = vmul.f32 0.6931472, %v336_v35 }
  0x18   :  { %v338_v39 = vpop.eup %337 }
  0x19   :  { %v41_v41 = vmul.f32 0.6931472, %v338_v39  ;;  %v340_v42 = vpop.eup %339  ;;  %v50_v43 = vmul.f32 %v47_v40, %v26_v7 }
  0x1a   :  { %v342_v47 = vpop.eup %341  ;;  %v49_v50 = vmul.f32 0.6931472, %v340_v42 }
  0x1b   :  { %v149_v48 = vmul.f32 %v112_v36, %v41_v41  ;;  %v150_v49 = vmul.f32 %v116_v37, %v41_v41  ;;  %v53_v52 = vsel %vm52_vm4, %v50_v43, 0.0  ;;  %v43_v53 = vmul.f32 0.6931472, %v342_v47 }
  0x1c   :  { %54 = vadd.xlane.f32.xlu0 %v53_v52  ;;  %v51_v55 = vmul.f32 %v49_v50, %v27_v21  ;;  %v151_v1 = vmul.f32 %v120_v57, %v41_v41  ;;  %v152_v8 = vmul.f32 %v124_v3, %v41_v41  ;;  %v197_v37 = vsub.s32 3, %v409_v11 }
  0x1d   :  { %v157_v54 = vsel %vm52_vm4, %v149_v48, 0.0  ;;  %v153_v56 = vmul.f32 %v128_v44, %v43_v53  ;;  %v160_v60 = vsel %vm52_vm4, %v150_v49, 0.0  ;;  %v154_v62 = vmul.f32 %v132_v51, %v43_v53 }
  0x1e   :  { %158 = vadd.xlane.f32.xlu1 %v157_v54  ;;  %v56_v61 = vsel %vm52_vm4, %v51_v55, 0.0  ;;  %v155_v5 = vmul.f32 %v136_v63, %v43_v53  ;;  %v163_v7 = vsel %vm52_vm4, %v151_v1, 0.0  ;;  %v156_v10 = vmul.f32 %v140_v6, %v43_v53 }
  0x1f   :  { %v169_v0 = vsel %vm52_vm4, %v153_v56, 0.0  ;;  %v172_v4 = vsel %vm52_vm4, %v154_v62, 0.0  ;;  %v166_v13 = vsel %vm52_vm4, %v152_v8, 0.0  ;;  %v264_v47 = vand.u32 127, %v64_v2 }
  0x20   :  { %57 = vadd.xlane.f32.xlu0 %v56_v61  ;;  %v175_v9 = vsel %vm52_vm4, %v155_v5, 0.0  ;;  %v178_v14 = vsel %vm52_vm4, %v156_v10, 0.0 }
  0x21   :  { %v267_v49 = vsub.s32 %v264_v47, %v409_v11 }
  0x22   :  { %161 = vadd.xlane.f32.xlu1 %v160_v60 }
  0x24   :  { %170 = vadd.xlane.f32.xlu0 %v169_v0 }
  0x26   :  { %173 = vadd.xlane.f32.xlu1 %v172_v4 }
  0x28   :  { %164 = vadd.xlane.f32.xlu0 %v163_v7 }
  0x2a   :  { %176 = vadd.xlane.f32.xlu1 %v175_v9 }
  0x2c   :  { %167 = vadd.xlane.f32.xlu0 %v166_v13 }
  0x2e   :  { %179 = vadd.xlane.f32.xlu1 %v178_v14 }
  0xa5   :  { %v55_v15 = vpop.xlane.xlu0 %54 }
  0xa6   :  { %v186_v18 = vrot.slane %v55_v15, %v425_v31  ;;  %v190_v20 = vrot.slane %v55_v15, %v189_v16  ;;  %v194_v33 = vrot.slane %v55_v15, %v193_v29  ;;  %v198_v39 = vrot.slane %v55_v15, %v197_v37 }
  0xa7   :  { %v159_v17 = vpop.xlane.xlu1 %158 }
  0xa8   :  { %v223_v19 = vsub.f32 %v159_v17, %v186_v18 }
  0xa9   :  { %v58_v21 = vpop.xlane.xlu0 %57 }
  0xaa   :  { %240 = vperm.xlu0 %333, %v223_v19   ;;  %v202_v24 = vrot.slane %v58_v21, %v425_v31  ;;  %v206_v28 = vrot.slane %v58_v21, %v189_v16  ;;  %v210_v36 = vrot.slane %v58_v21, %v193_v29  ;;  %v214_v42 = vrot.slane %v58_v21, %v197_v37 }
  0xab   :  { %v162_v22 = vpop.xlane.xlu1 %161 }
  0xac   :  { %v224_v23 = vsub.f32 %v162_v22, %v190_v20 }
  0xad   :  { %v171_v25 = vpop.xlane.xlu0 %170 }
  0xae   :  { %243 = vperm.xlu1 %334, %v224_v23   ;;  %v227_v26 = vsub.f32 %v171_v25, %v202_v24 }
  0xaf   :  { %v174_v27 = vpop.xlane.xlu1 %173 }
  0xb0   :  { %v228_v30 = vsub.f32 %v174_v27, %v206_v28 }
  0xb1   :  { %v165_v32 = vpop.xlane.xlu0 %164 }
  0xb2   :  { %252 = vperm.xlu1 %334, %v227_v26   ;;  %v225_v34 = vsub.f32 %v165_v32, %v194_v33 }
  0xb3   :  { %v177_v35 = vpop.xlane.xlu1 %176 }
  0xb4   :  { %v229_v38 = vsub.f32 %v177_v35, %v210_v36 }
  0xb5   :  { %v168_v31 = vpop.xlane.xlu0 %167 }
  0xb6   :  { %255 = vperm.xlu1 %334, %v228_v30   ;;  %v226_v40 = vsub.f32 %v168_v31, %v198_v39 }
  0xb7   :  { %v180_v41 = vpop.xlane.xlu1 %179 }
  0xb8   :  { %v230_v43 = vsub.f32 %v180_v41, %v214_v42 }
  0xba   :  { %246 = vperm.xlu1 %334, %v225_v34  }
  0xbe   :  { %258 = vperm.xlu1 %334, %v229_v38  }
  0xc2   :  { %249 = vperm.xlu1 %334, %v226_v40  }
  0xc6   :  { %261 = vperm.xlu1 %334, %v230_v43  }
 0x125   :  { %v241_v50 = vpop.permute.xlu0 %240 }
 0x126   :  { %v268_v54 = vrot.slane %v241_v50, %v267_v49 }
 0x129   :  { %v244_v44 = vpop.permute.xlu1 %243 }
 0x12a   :  { %v272_v52 = vrot.slane %v244_v44, %v267_v49 }
 0x12c   :  { %v298_v56 = vsel %vm297_vm5, %v272_v52, %v268_v54 }
 0x12d   :  { %v253_v45 = vpop.permute.xlu1 %252 }
 0x12e   :  { %v284_v11 = vrot.slane %v253_v45, %v267_v49 }
 0x131   :  { %v256_v46 = vpop.permute.xlu1 %255 }
 0x132   :  { %v288_v57 = vrot.slane %v256_v46, %v267_v49 }
 0x134   :  { %v303_v62 = vsel %vm297_vm5, %v288_v57, %v284_v11 }
 0x135   :  { %v247_v48 = vpop.permute.xlu1 %246 }
 0x136   :  { %v276_v53 = vrot.slane %v247_v48, %v267_v49 }
 0x138   :  { %v300_v59 = vsel %vm299_vm6, %v276_v53, %v298_v56 }
 0x139   :  { %v259_v51 = vpop.permute.xlu1 %258 }
 0x13a   :  { %v292_v2 = vrot.slane %v259_v51, %v267_v49 }
 0x13c   :  { %v304_v0 = vsel %vm299_vm6, %v292_v2, %v303_v62 }
 0x13d   :  { %v250_v55 = vpop.permute.xlu1 %249 }
 0x13e   :  { %v280_v58 = vrot.slane %v250_v55, %v267_v49 }
 0x140   :  { %v302_v60 = vsel %vm301_vm7, %v280_v58, %v300_v59 }
 0x141   :  { %309 = vst.msk [vmem:[#allocation2] sm:$0xf] %vm308_vm8, %v302_v60  ;;  %v262_v61 = vpop.permute.xlu1 %261 }
 0x142   :  { %v296_v63 = vrot.slane %v262_v61, %v267_v49 }
 0x144   :  { %v305_v1 = vsel %vm301_vm7, %v296_v63, %v304_v0 }
 0x145   :  { %310 = vst.msk [vmem:[#allocation2 + $0x4] sm:$0xf] %vm308_vm8, %v305_v1 }
 0x146   :  { %354 = shalt.err (!%p351_p4)
}
 0x147   :  { %s369_s3 = smov 64   ;;  %s370_s5 = smov 4  }
 0x148   :  { %322 = dma.vmem_to_hbm [thread:$0]  %s317_s1, 128, %s465_s4, [#allocation3], %s369_s3, %s369_s3, %s370_s5  }
 0x149   :  { %363 = dma.done.wait [#allocation3], 128  }
 0x14a   :  { %364 = vsyncadd [#allocation3], 4294967168 }
 0x14b   :  { %326 = vsyncpa [#allocation3], 1 }

</bundles_post_ra>
